<compile_context>
chip_gen: v7x
topology: tpu7x:2x2x1
jax: 0.10.0
libtpu: 0.0.40
codegen_flags: <defaults>
</compile_context>

<pallas_src>
import functools
import math

import jax
import jax.numpy as jnp
import numpy as np
from jax.experimental import pallas as pl
from jax.experimental.pallas import tpu as pltpu


def _cdiv(a, b):
    return (a + b - 1) // b


def _round_up(a, b):
    return _cdiv(a, b) * b


def _lane_packing(embed_dim, compute_dtype):
    """Lane-packing factor r and packed embed width Ep (multiple of 128)."""
    itemsize = np.dtype(compute_dtype).itemsize
    r = math.lcm(embed_dim, 128) // embed_dim
    # f32 path: kron flop inflation beyond 2x sits near v5e's f32 MXU/HBM
    # roofline knee -> cap r.  bf16 has ample MXU headroom on all generations.
    max_r = 2 if itemsize == 4 else 8
    if r > max_r:
        # Fall back to zero-padded weight columns: stores stay 128-lane dense,
        # at the cost of some wasted output columns (cropped in the wrapper).
        return 1, _round_up(embed_dim, 128)
    return r, r * embed_dim


def _patch_embed_kernel(patches_ref, w_ref, b_ref, out_ref):
    # patches_ref: (TM, Kp) compute_dtype, streamed per grid step
    # w_ref:       (Kp, Ep) compute_dtype, resident packed projection weight
    # b_ref:       (1,  Ep) float32,       resident packed bias
    # out_ref:     (TM, Ep) float32, lane-dense (Ep % 128 == 0)
    acc = jnp.dot(patches_ref[...], w_ref[...], preferred_element_type=jnp.float32)
    out_ref[...] = (acc + b_ref[...]).astype(out_ref.dtype)


def pack_patch_embed_params(weight, bias, *, compute_dtype=jnp.bfloat16):
    """One-time packing of the Conv2d weight/bias (hoisted out of the forward)."""
    E = weight.shape[0]
    K = weight.shape[1] * weight.shape[2] * weight.shape[3]
    r, Ep = _lane_packing(E, compute_dtype)
    w_mat = weight.reshape(E, K).T.astype(jnp.float32)               # (K, E)
    b_vec = bias.astype(jnp.float32)
    if r > 1:
        # block-diagonal kron(I_r, W): r output rows per packed kernel row
        w_packed = jnp.kron(jnp.eye(r, dtype=jnp.float32), w_mat)    # (r*K, r*E)
        b_packed = jnp.tile(b_vec, r)[None, :]                       # (1, r*E)
    else:
        w_packed = jnp.pad(w_mat, ((0, 0), (0, Ep - E)))             # (K, Ep)
        b_packed = jnp.pad(b_vec, (0, Ep - E))[None, :]              # (1, Ep)
    return w_packed.astype(compute_dtype), b_packed


def patch_embedding_forward(
    x,
    w_packed,
    b_packed,
    *,
    patch_dim,
    padding,
    embed_dim,
    compute_dtype=jnp.bfloat16,
    tile_m=1024,
):
    """Reproduces PatchEmbedding.forward.

    x:         (B, C, H, W) float32, NCHW (PyTorch convention)
    w_packed:  (Kp, Ep)     packed projection weight (pack_patch_embed_params)
    b_packed:  (1,  Ep)     packed bias
    returns:   (B, H_out*W_out, embed_dim) float32
    """
    B, C, H, W = x.shape
    Ph, Pw = patch_dim
    pad_h, pad_w = padding
    E = embed_dim
    K = C * Ph * Pw
    r, Ep = _lane_packing(E, compute_dtype)
    Kp = r * K
    assert w_packed.shape == (Kp, Ep), (w_packed.shape, (Kp, Ep))
    assert b_packed.shape == (1, Ep)

    # --- glue: cast to the streaming dtype first (the im2col copy pass then
    # moves half the bytes), symmetric zero pad (nn.Conv2d padding), crop, and
    # im2col in PyTorch (C, Ph, Pw) flattening order.
    # TODO(synk): fold the im2col reorder into the kernel (per-row-slab VMEM
    # reshuffle over a (B, Ho-tile) grid) to remove this extra HBM pass.
    xc = x.astype(compute_dtype)
    xp = jnp.pad(xc, ((0, 0), (0, 0), (pad_h, pad_h), (pad_w, pad_w)))
    Hp_, Wp_ = H + 2 * pad_h, W + 2 * pad_w
    H_out = (Hp_ - Ph) // Ph + 1
    W_out = (Wp_ - Pw) // Pw + 1
    xp = xp[:, :, : H_out * Ph, : W_out * Pw]
    xp = xp.reshape(B, C, H_out, Ph, W_out, Pw)
    xp = jnp.transpose(xp, (0, 2, 4, 1, 3, 5))            # (B, Ho, Wo, C, Ph, Pw)
    patches = xp.reshape(B * H_out * W_out, K)            # (M, K)
    M = B * H_out * W_out

    # --- M tiling on the packed-M axis.  Sublane rounding: 16 for bf16, 8 f32.
    itemsize = np.dtype(compute_dtype).itemsize
    sub = 32 // itemsize
    Mp_min = _round_up(_cdiv(M, r), sub)                  # packed rows
    # Aim for >= 4 grid steps (2 per v7x TensorCore + pipelining); tile_m=1024
    # default exploits v5e/v6e's 128 MiB VMEM for big streamed tiles.
    target_steps = 4
    TM = max(sub, min(tile_m, _round_up(_cdiv(Mp_min, target_steps), sub)))
    Mp = _round_up(Mp_min, TM)
    grid_steps = Mp // TM

    M_pad = Mp * r
    if M_pad != M:
        patches = jnp.pad(patches, ((0, M_pad - M), (0, 0)))
    patches_packed = patches.reshape(Mp, Kp)              # free row-major reshape

    # --- pipeline depth: a third buffer on the streamed patches helps hide DMA
    # issue latency when per-step tiles are small and the grid is deep.
    use_triple_buffer = grid_steps >= 4 and TM * Kp * itemsize <= (2 << 20)
    n_in_buf = 3 if use_triple_buffer else 2

    # --- VMEM budget: ~1.5x the real footprint, clamped to [4 MiB, 48 MiB]
    # (48 MiB fits v7x's 64 MiB physical VMEM; v5e/v6e have 128 MiB).
    footprint = (
        n_in_buf * TM * Kp * itemsize      # streamed patches tiles
        + 2 * TM * Ep * 4                  # streamed f32 output tiles
        + 2 * Kp * Ep * itemsize           # resident packed weight (x2 margin)
        + 2 * Ep * 4                       # resident bias
    )
    vmem_limit = int(min(48 << 20, max(4 << 20, footprint + footprint // 2)))

    cost = pl.CostEstimate(
        flops=2 * M * K * E,               # true flops, not the r-inflated count
        transcendentals=0,
        bytes_accessed=M * K * itemsize + Kp * Ep * itemsize + M * E * 4 + Ep * 4,
    )

    if use_triple_buffer:
        patches_spec = pl.BlockSpec(
            (TM, Kp), lambda i: (i, 0), pipeline_mode=pl.Buffered(3)
        )
    else:
        patches_spec = pl.BlockSpec((TM, Kp), lambda i: (i, 0))

    out_packed = pl.pallas_call(
        _patch_embed_kernel,
        out_shape=jax.ShapeDtypeStruct((Mp, Ep), jnp.float32),
        grid=(grid_steps,),
        in_specs=[
            patches_spec,                                  # streamed per tile
            pl.BlockSpec((Kp, Ep), lambda i: (0, 0)),      # resident weight
            pl.BlockSpec((1, Ep), lambda i: (0, 0)),       # resident bias
        ],
        out_specs=pl.BlockSpec((TM, Ep), lambda i: (i, 0)),
        compiler_params=pltpu.CompilerParams(
            dimension_semantics=("parallel",),             # megacore-shardable
            vmem_limit_bytes=vmem_limit,
        ),
        cost_estimate=cost,
    )(patches_packed, w_packed, b_packed)

    # --- unpack lanes, crop padding, emit PyTorch's (B, Ho*Wo, E) layout.
    if r > 1:
        out = out_packed.reshape(M_pad, E)[:M]             # free reshape + crop
    else:
        out = out_packed[:M, :E]
    return out.reshape(B, H_out * W_out, E)


if __name__ == "__main__":
    # Module config: PatchEmbedding(image_dim=(16,16), patch_dim=(4,4),
    #                               in_channels=4, embed_dim=32)
    image_dim = (16, 16)
    patch_dim = (4, 4)
    in_channels = 4
    embed_dim = 32
    batch = 2

    pad_h = (patch_dim[0] - image_dim[0] % patch_dim[0]) % patch_dim[0]
    pad_w = (patch_dim[1] - image_dim[1] % patch_dim[1]) % patch_dim[1]
    padding = (pad_h, pad_w)

    key = jax.random.PRNGKey(0)
    kx, kw, kb = jax.random.split(key, 3)
    x = jax.random.normal(kx, (batch, in_channels, *image_dim), dtype=jnp.float32)
    weight = (
        jax.random.normal(kw, (embed_dim, in_channels, *patch_dim), dtype=jnp.float32)
        * 0.02
    )
    bias = jax.random.normal(kb, (embed_dim,), dtype=jnp.float32) * 0.02

    # Weight/bias packing hoisted out of the per-call path (done once).
    w_packed, b_packed = pack_patch_embed_params(weight, bias)

    fwd = jax.jit(
        functools.partial(
            patch_embedding_forward,
            patch_dim=patch_dim,
            padding=padding,
            embed_dim=embed_dim,
        )
    )
    out = jax.block_until_ready(fwd(x, w_packed, b_packed))

    # pure-JAX f32 reference (strided conv via dot on the same im2col)
    Ho = image_dim[0] // patch_dim[0]
    Wo = image_dim[1] // patch_dim[1]
    xr = x.reshape(batch, in_channels, Ho, patch_dim[0], Wo, patch_dim[1])
    xr = jnp.transpose(xr, (0, 2, 4, 1, 3, 5)).reshape(batch * Ho * Wo, -1)
    ref = (xr @ weight.reshape(embed_dim, -1).T + bias).reshape(
        batch, Ho * Wo, embed_dim
    )
    assert out.shape == (batch, Ho * Wo, embed_dim)
    # bf16 streaming with f32 accumulation -> loose tolerance vs f32 reference
    assert jnp.allclose(out, ref, atol=2e-2, rtol=2e-2)

    print("KERNEL_OK")
</pallas_src>

<mosaic_0001>
module attributes {stable_mosaic.version = 11 : i64} {
  func.func @_patch_embed_kernel(%arg0: i32, %arg1: memref<16x256xbf16, #tpu.memory_space<vmem>>, %arg2: memref<256x128xbf16, #tpu.memory_space<vmem>>, %arg3: memref<1x128xf32, #tpu.memory_space<vmem>>, %arg4: memref<16x128xf32, #tpu.memory_space<vmem>>) attributes {dimension_semantics = [#tpu.dimension_semantics<parallel>], iteration_bounds = array<i64: 1>, scalar_prefetch = 0 : i64, scratch_operands = 0 : i64, tpu.core_type = #tpu.core_type<tc>, window_params = [{transform_indices = @transform_0, window_bounds = array<i64: 16, 256>}, {pipeline_mode = #tpu.pipeline_mode<synchronous>, transform_indices = @transform_1, window_bounds = array<i64: 256, 128>}, {pipeline_mode = #tpu.pipeline_mode<synchronous>, transform_indices = @transform_2, window_bounds = array<i64: 1, 128>}, {transform_indices = @transform_3, window_bounds = array<i64: 16, 128>}]} {
    %c0 = arith.constant 0 : index
    %c0_0 = arith.constant 0 : index
    %0 = vector.load %arg1[%c0, %c0_0] : memref<16x256xbf16, #tpu.memory_space<vmem>>, vector<16x256xbf16>
    %c0_1 = arith.constant 0 : index
    %c0_2 = arith.constant 0 : index
    %1 = vector.load %arg2[%c0_1, %c0_2] : memref<256x128xbf16, #tpu.memory_space<vmem>>, vector<256x128xbf16>
    %cst = arith.constant dense<0.000000e+00> : vector<16x128xf32>
    %2 = tpu.matmul %0, %1, %cst {dimension_numbers = #tpu.dot_dimension_numbers<[1], [0], [0], [1], [0, 0, 1, 1], [], []>} : vector<16x256xbf16>, vector<256x128xbf16>, vector<16x128xf32> -> vector<16x128xf32>
    %c0_3 = arith.constant 0 : index
    %c0_4 = arith.constant 0 : index
    %3 = vector.load %arg3[%c0_3, %c0_4] : memref<1x128xf32, #tpu.memory_space<vmem>>, vector<1x128xf32>
    %4 = vector.broadcast %3 : vector<1x128xf32> to vector<16x128xf32>
    %5 = arith.addf %2, %4 : vector<16x128xf32>
    %c0_5 = arith.constant 0 : index
    %c0_6 = arith.constant 0 : index
    %6 = vector.load %arg4[%c0_5, %c0_6] : memref<16x128xf32, #tpu.memory_space<vmem>>, vector<16x128xf32>
    tpu.vector_store %arg4[%c0_5, %c0_6], %5 {strides = array<i32>} : memref<16x128xf32, #tpu.memory_space<vmem>>, vector<16x128xf32>,
    return
  }
  func.func @transform_0(%arg0: i32) -> (i32, i32) {
    %c0_i32 = arith.constant 0 : i32
    %c0_i32_0 = arith.constant 0 : i32
    return %arg0, %c0_i32 : i32, i32
  }
  func.func @transform_1(%arg0: i32) -> (i32, i32) {
    %c0_i32 = arith.constant 0 : i32
    %c0_i32_0 = arith.constant 0 : i32
    %c0_i32_1 = arith.constant 0 : i32
    return %c0_i32, %c0_i32_0 : i32, i32
  }
  func.func @transform_2(%arg0: i32) -> (i32, i32) {
    %c0_i32 = arith.constant 0 : i32
    %c0_i32_0 = arith.constant 0 : i32
    %c0_i32_1 = arith.constant 0 : i32
    return %c0_i32, %c0_i32_0 : i32, i32
  }
  func.func @transform_3(%arg0: i32) -> (i32, i32) {
    %c0_i32 = arith.constant 0 : i32
    %c0_i32_0 = arith.constant 0 : i32
    return %arg0, %c0_i32 : i32, i32
  }
}

</mosaic_0001>

<bundles_post_ra>
// kernel: patch_embedding_forward.1
= control target key start
LH: loop header
LB: loop body
LE: loop exit
PB: predicated region body
PF: predicated region fallthrough
CT: control target
= control target key end

     0   :  { %s352_s1 = inlined_call_operand.vmem [shape: bf16[256,128], index: 1, kind: input, shape index: {}]   ;;  %s353_s0 = inlined_call_operand.vmem [shape: bf16[16,256], index: 0, kind: input, shape index: {}]   ;;  %s354_s2 = inlined_call_operand.vmem [shape: f32[1,128], index: 2, kind: input, shape index: {}]   ;;  %s355_s3 = inlined_call_operand.vmem [shape: f32[16,128], index: 3, kind: output, shape index: {}]  }
   0x1   :  { %v250_v0 = vld [vmem:[%s352_s1 + $0x40] sm:$0xff]   ;;  %v252_v2 = vld [vmem:[%s352_s1 + $0x48] sm:$0xff]   ;;  %v254_v4 = vld [vmem:[%s352_s1 + $0x50] sm:$0xff]  }
   0x2   :  { %v251_v1 = vld [vmem:[%s352_s1] sm:$0xff]   ;;  %228 = vmatprep.subr.bf16.mxu0 %v250_v0  ;;  %v253_v3 = vld [vmem:[%s352_s1 + $0x8] sm:$0xff]   ;;  %v255_v5 = vld [vmem:[%s352_s1 + $0x10] sm:$0xff]  }
   0x3   :  { %229 = vmatpush3.bf16.msra.mxu0 %v251_v1  ;;  %v256_v6 = vld [vmem:[%s352_s1 + $0x58] sm:$0xff]   ;;  %v258_v8 = vld [vmem:[%s352_s1 + $0x60] sm:$0xff]   ;;  %v260_v10 = vld [vmem:[%s352_s1 + $0x68] sm:$0xff]  }
   0x4   :  { %230 = vmatprep.subr.bf16.mxu0 %v252_v2  ;;  %v257_v7 = vld [vmem:[%s352_s1 + $0x18] sm:$0xff]   ;;  %v259_v9 = vld [vmem:[%s352_s1 + $0x20] sm:$0xff]   ;;  %v261_v12 = vld [vmem:[%s352_s1 + $0x28] sm:$0xff]  }
   0x5   :  { %v268_v11 = vld [vmem:[%s353_s0 + $0x4] ss:$8 sps:$4 sm:$0xff]   ;;  %v262_v13 = vld [vmem:[%s352_s1 + $0x70] sm:$0xff]   ;;  %v264_v15 = vld [vmem:[%s352_s1 + $0x78] sm:$0xff]  }
   0x6   :  { %194 = vmatprep.mubr.bf16.mxu0 %v268_v11  ;;  %v263_v14 = vld [vmem:[%s352_s1 + $0x30] sm:$0xff]   ;;  %v265_v16 = vld [vmem:[%s352_s1 + $0x38] sm:$0xff]   ;;  %v266_v17 = vld [vmem:[%s353_s0] ss:$8 sps:$4 sm:$0xff]  }
   0x7   :  { %231 = vmatpush3.bf16.msra.mxu0 %v253_v3  ;;  %v209_v19 = vld [vmem:[%s354_s2] ss:$0 sm:$0xff] }
   0x8   :  { %232 = vmatprep.subr.bf16.mxu0 %v254_v4 }
   0xb   :  { %233 = vmatpush3.bf16.msra.mxu0 %v255_v5 }
   0xc   :  { %234 = vmatprep.subr.bf16.mxu0 %v256_v6 }
   0xf   :  { %235 = vmatpush3.bf16.msra.mxu0 %v257_v7 }
  0x10   :  { %236 = vmatprep.subr.bf16.mxu0 %v258_v8 }
  0x13   :  { %237 = vmatpush3.bf16.msra.mxu0 %v259_v9 }
  0x14   :  { %238 = vmatprep.subr.bf16.mxu0 %v260_v10 }
  0x17   :  { %239 = vmatpush3.bf16.msra.mxu0 %v261_v12 }
  0x18   :  { %240 = vmatprep.subr.bf16.mxu0 %v262_v13 }
  0x1b   :  { %241 = vmatpush3.bf16.msra.mxu0 %v263_v14 }
  0x1c   :  { %242 = vmatprep.subr.bf16.mxu0 %v264_v15 }
  0x1f   :  { %243 = vmatpush3.bf16.msra.mxu0 %v265_v16 }
  0x22   :  { %195 = vmatmul.mubr.bf16.vlgmr.msra.gmra.mrb[0].mxu0 %v266_v17 }
  0xf5   :  { %v244_v18 = vpop.f32.mrb[0].mxu0 }
  0xf6   :  { %v245_v20 = vpop.f32.mrb[1].mxu0 }
  0xf7   :  { %v246_v21 = vadd.f32 %v245_v20, %v244_v18  ;;  %v247_v22 = vpop.f32.mrb[2].mxu0 }
  0xf8   :  { %v248_v23 = vpop.f32.mrb[3].mxu0 }
  0xf9   :  { %v197_v24 = vadd.f32 %v246_v21, %v209_v19  ;;  %v249_v25 = vadd.f32 %v248_v23, %v247_v22 }
  0xfb   :  { %203 = vst [vmem:[%s355_s3] sm:$0xff] %v197_v24  ;;  %v200_v26 = vadd.f32 %v249_v25, %v209_v19 }
  0xfd   :  { %204 = vst [vmem:[%s355_s3 + $0x8] sm:$0xff] %v200_v26 }

</bundles_post_ra>
